<compile_context>
chip_gen: v6e
topology: v6e:2x2x1
jax: 0.10.0
libtpu: 0.0.40
codegen_flags: <defaults>
</compile_context>

<pallas_src>
import numpy as np
import jax
import jax.numpy as jnp
from jax.experimental import pallas as pl
from jax.experimental.pallas import tpu as pltpu

NODE_DIM = 32      # node_dim
TIME_STEPS = 8     # len(time_steps_to_predict)
MEM_SIZE = 8       # args['memory_size']


def _make_kernel(tm, d, t_steps, slab_w):
    f32 = jnp.float32
    bf16 = jnp.bfloat16
    inv_sqrt_d = float(d) ** -0.5

    pred_off = 0
    mu_off = t_steps
    sig_off = t_steps + d
    emb_off = t_steps + 2 * d
    pad_off = t_steps + 3 * d
    pad_w = slab_w - pad_off

    def kernel(
        dt_ref,                       # SMEM (T,)      Euler step sizes
        cas_feat_ref,                 # (tm, D) f32    gathered cascade states
        mem_t_ref,                    # (D, M)  bf16   memory, pre-transposed
        mem_ref,                      # (M, D)  bf16   memory
        w_emb_ref, b_emb_ref,         # embedding module ('seq' -> projection)
        w_musig_ref, b_musig_ref,     # fused EncodeZ0 mean||std head (D, 2D)
        w_pred_ref, b_pred_ref,       # predictor column (D, 1), bias (1, 1)
        w1a_ref, b1_ref,              # CasODE hidden layer, zero-padded row (D+1, D)
        w2a_ref, b2a_ref,             # CasODE output layer augmented (D, D+1)
        slab_ref,                     # out (tm, slab_w)  [pred|mu|sig|emb|pad]
    ):
        x = cas_feat_ref[...]

        # --- embedding module ('seq') ---------------------------------------
        # TODO(synk): the real seq embedding module aggregates neighbor/user
        # histories with time encoding; simplified to a learned projection of
        # the gathered cascade dynamic state.
        emb = jnp.tanh(
            jnp.dot(x.astype(bf16), w_emb_ref[...],
                    preferred_element_type=f32) + b_emb_ref[...])

        # --- EncodeZ0 (fused mean/std heads) ---------------------------------
        y = jnp.dot(emb.astype(bf16), w_musig_ref[...],
                    preferred_element_type=f32) + b_musig_ref[...]
        # emb is final here: stash it in the output slab to end its live range.
        slab_ref[:, emb_off:emb_off + d] = emb
        mu = y[:, :d]
        sig = jax.nn.softplus(y[:, d:])
        slab_ref[:, sig_off:sig_off + d] = sig
        slab_ref[:, mu_off:mu_off + d] = mu
        if pad_w > 0:
            slab_ref[:, pad_off:] = jnp.zeros((tm, pad_w), f32)

        # --- ExternalMemory attention read (memory pre-transposed) -----------
        scores = jnp.dot(mu.astype(bf16), mem_t_ref[...],
                         preferred_element_type=f32) * inv_sqrt_d
        scores = scores - jnp.max(scores, axis=-1, keepdims=True)
        p = jnp.exp(scores)
        attn = p * pl.reciprocal(jnp.sum(p, axis=-1, keepdims=True), approx=True)
        read = jnp.dot(attn.astype(bf16), mem_ref[...], preferred_element_type=f32)

        # --- CasODE: fixed-step Euler with the popularity predictor folded in
        # TODO(synk): reference uses torchdiffeq adaptive solver; fixed-step
        # Euler over time_steps_to_predict is used here.
        # State z_aug = [z | z @ w_pred + b_pred]  (lane D is the running pred).
        z0 = mu + read
        s0 = jnp.dot(z0.astype(bf16), w_pred_ref[...],
                     preferred_element_type=f32) + b_pred_ref[...]
        z_aug = jnp.concatenate([z0, s0], axis=-1)               # (tm, D+1)

        w1a = w1a_ref[...]            # (D+1, D), last row is zeros
        w2a = w2a_ref[...]            # (D, D+1), last col = w2 @ w_pred
        b1 = b1_ref[...]              # (1, D)
        b2a = b2a_ref[...]            # (1, D+1)

        for step in range(t_steps):   # static unroll, T is small
            dt = dt_ref[step]
            h = jnp.tanh(
                jnp.dot(z_aug.astype(bf16), w1a, preferred_element_type=f32) + b1)
            du = jnp.dot(h.astype(bf16), w2a, preferred_element_type=f32) + b2a
            z_aug = z_aug + dt * du
            # lane D of z_aug == z_step @ w_pred + b_pred == pred[:, step]
            slab_ref[:, pred_off + step:pred_off + step + 1] = z_aug[:, d:d + 1]

    return kernel


def nodept_pallas(cas_feat, memory, params, dt, tm=None):
    """cas_feat: (Nt, D) gathered cascade states; memory: (M, D); dt: (T,)."""
    nt, d = cas_feat.shape
    t = dt.shape[0]
    bf16 = jnp.bfloat16
    f32 = jnp.float32

    def round_up(x, m):
        return ((x + m - 1) // m) * m

    if tm is None:
        # Fill MXU rows; cap at 128 so the (tm, <=D+1) f32 arrays live in the
        # Euler loop stay well inside the 64-vreg file (each is tm/8 vregs).
        # >=2 tiles appear naturally once Nt > 128, letting
        # dimension_semantics=("parallel",) shard rows across v7x's 2 TCs.
        tm = min(128, round_up(max(nt, 1), 8))
    tm = max(8, round_up(tm, 8))

    n_tiles = int(pl.cdiv(nt, tm))
    nt_pad = n_tiles * tm
    if nt_pad != nt:
        # TODO(synk): for very large Nt this extra HBM pass could be avoided
        # with a ragged last block; negligible at typical batch sizes.
        cas_feat = jnp.pad(cas_feat, ((0, nt_pad - nt), (0, 0)))

    # --- wrapper-side parameter fusion / casting (one-time, off hot path) ----
    w_emb = params["w_emb"].astype(bf16)
    w_musig = jnp.concatenate([params["w_mu"], params["w_sig"]], axis=1).astype(bf16)
    b_musig = jnp.concatenate([params["b_mu"], params["b_sig"]], axis=1).astype(f32)

    # Predictor fold: w2_aug = [w2 | w2 @ w_pred], b2_aug = [b2 | b2 @ w_pred].
    # w1 gets a zero row so the augmented state feeds the hidden layer directly.
    w_pred = params["w_pred"]                                      # (D, 1)
    w_pred_bf = w_pred.astype(bf16)
    w1_aug = jnp.concatenate([params["w1"], jnp.zeros((1, d), f32)],
                             axis=0).astype(bf16)                  # (D+1, D)
    w2_aug = jnp.concatenate([params["w2"], params["w2"] @ w_pred],
                             axis=1).astype(bf16)                  # (D, D+1)
    b2_aug = jnp.concatenate([params["b2"], params["b2"] @ w_pred],
                             axis=1).astype(f32)                   # (1, D+1)

    mem_bf = memory.astype(bf16)          # (M, D) for the weighted read
    mem_t = memory.T.astype(bf16)         # (D, M): no in-kernel transpose

    slab_w = 128 * int(pl.cdiv(t + 3 * d, 128))
    kernel = _make_kernel(tm, d, t, slab_w)

    def full(arr):
        shape = arr.shape
        return pl.BlockSpec(shape, lambda i: tuple(0 for _ in shape))

    in_specs = [
        pl.BlockSpec(memory_space=pltpu.MemorySpace.SMEM),   # dt
        pl.BlockSpec((tm, d), lambda i: (i, 0)),             # cas_feat (tiled)
        full(mem_t), full(mem_bf),
        full(w_emb), full(params["b_emb"]),
        full(w_musig), full(b_musig),
        full(w_pred_bf), full(params["b_pred"]),
        full(w1_aug), full(params["b1"]),
        full(w2_aug), full(b2_aug),
    ]
    out_specs = pl.BlockSpec((tm, slab_w), lambda i: (i, 0))
    out_shape = jax.ShapeDtypeStruct((nt_pad, slab_w), f32)

    slab = pl.pallas_call(
        kernel,
        out_shape=out_shape,
        grid=(n_tiles,),
        in_specs=in_specs,
        out_specs=out_specs,
        compiler_params=pltpu.CompilerParams(
            dimension_semantics=("parallel",)),     # shards rows on v7x 2-TC
    )(
        dt, cas_feat, mem_t, mem_bf,
        w_emb, params["b_emb"],
        w_musig, b_musig,
        w_pred_bf, params["b_pred"],
        w1_aug, params["b1"],
        w2_aug, b2_aug,
    )

    pred = slab[:nt, 0:t]
    mu = slab[:nt, t:t + d]
    sig = slab[:nt, t + d:t + 2 * d]
    emb = slab[:nt, t + 2 * d:t + 3 * d]
    return pred, mu, sig, emb


def make_params(key, d):
    """Deterministic synthetic parameter init (no checkpoint)."""
    ks = jax.random.split(key, 8)
    scale = 1.0 / np.sqrt(d)
    return {
        "w_emb": jax.random.normal(ks[0], (d, d), jnp.float32) * scale,
        "b_emb": jnp.zeros((1, d), jnp.float32),
        "w_mu": jax.random.normal(ks[1], (d, d), jnp.float32) * scale,
        "b_mu": jnp.zeros((1, d), jnp.float32),
        "w_sig": jax.random.normal(ks[2], (d, d), jnp.float32) * scale,
        "b_sig": jnp.zeros((1, d), jnp.float32),
        "w1": jax.random.normal(ks[3], (d, d), jnp.float32) * scale,
        "b1": jnp.zeros((1, d), jnp.float32),
        "w2": jax.random.normal(ks[4], (d, d), jnp.float32) * scale,
        "b2": jnp.zeros((1, d), jnp.float32),
        "w_pred": jax.random.normal(ks[5], (d, 1), jnp.float32) * scale,
        "b_pred": jnp.zeros((1, 1), jnp.float32),
    }


def nodept_forward(source_nodes, destination_nodes, trans_cascades, edge_times,
                   pub_times, target_idx, time_steps_to_predict,
                   cas_state, memory, params):
    """Mirrors NODEPT.forward (use_dynamic=False)."""
    n_events = trans_cascades.shape[0]
    t = time_steps_to_predict.shape[0]
    d = cas_state.shape[1]

    # TODO(synk): hgraph.insert / dynamic-state message passing are graph
    # bookkeeping with no tensor hot path (use_dynamic=False) -> skipped.
    pred = jnp.zeros((n_events, t), jnp.float32)
    first_point = jnp.zeros((n_events, d, 2), jnp.float32)

    target_cascades = trans_cascades[target_idx]
    if target_cascades.shape[0] == 0:
        return pred, first_point, memory

    cas_feat = cas_state[target_cascades]                       # gather (glue)
    dt = jnp.diff(time_steps_to_predict, prepend=0.0).astype(jnp.float32)

    pred_t, mu, sig, emb = nodept_pallas(cas_feat, memory, params, dt)

    pred = pred.at[target_idx].set(pred_t)
    first_point_t = jnp.stack([mu, sig], axis=-1)               # (Nt, D, 2)
    first_point = first_point.at[target_idx].set(first_point_t)

    # external_memory.update_memory(emb)
    # TODO(synk): simple EMA write; the reference ExternalMemory update rule
    # may differ (glue outside the kernel).
    new_memory = 0.9 * memory + 0.1 * jnp.mean(emb, axis=0, keepdims=True)
    return pred, first_point, new_memory


if __name__ == "__main__":
    key = jax.random.PRNGKey(0)
    k_par, k_cas, k_mem = jax.random.split(key, 3)

    n_nodes = {"cas": 32, "user": 64}
    n_events = 16

    params = make_params(k_par, NODE_DIM)
    cas_state = jax.random.normal(k_cas, (n_nodes["cas"], NODE_DIM), jnp.float32)
    memory = jax.random.normal(k_mem, (MEM_SIZE, NODE_DIM), jnp.float32) * 0.1

    # synthetic event batch (mirrors forward() signature)
    source_nodes = np.arange(n_events) % n_nodes["user"]
    destination_nodes = (np.arange(n_events) * 3 + 1) % n_nodes["user"]
    trans_cascades = jnp.asarray(np.arange(n_events) % n_nodes["cas"],
                                 dtype=jnp.int32)
    edge_times = jnp.linspace(0.0, 1.0, n_events, dtype=jnp.float32)
    pub_times = jnp.zeros((n_events,), jnp.float32)
    target_idx = jnp.arange(8, dtype=jnp.int32)         # 8 target cascades
    time_steps_to_predict = jnp.linspace(0.1, 1.0, TIME_STEPS,
                                         dtype=jnp.float32)

    pred, first_point, new_memory = nodept_forward(
        source_nodes, destination_nodes, trans_cascades, edge_times, pub_times,
        target_idx, time_steps_to_predict, cas_state, memory, params)

    jax.block_until_ready((pred, first_point, new_memory))
    assert pred.shape == (n_events, TIME_STEPS)
    assert first_point.shape == (n_events, NODE_DIM, 2)
    assert bool(jnp.all(jnp.isfinite(pred))) and bool(
        jnp.all(jnp.isfinite(first_point)))
    print("KERNEL_OK")
</pallas_src>

<mosaic_0001>
module attributes {stable_mosaic.version = 11 : i64} {
  func.func @kernel(%arg0: i32, %arg1: memref<8xf32, #tpu.memory_space<smem>>, %arg2: memref<8x32xf32, #tpu.memory_space<vmem>>, %arg3: memref<32x8xbf16, #tpu.memory_space<vmem>>, %arg4: memref<8x32xbf16, #tpu.memory_space<vmem>>, %arg5: memref<32x32xbf16, #tpu.memory_space<vmem>>, %arg6: memref<1x32xf32, #tpu.memory_space<vmem>>, %arg7: memref<32x64xbf16, #tpu.memory_space<vmem>>, %arg8: memref<1x64xf32, #tpu.memory_space<vmem>>, %arg9: memref<32x1xbf16, #tpu.memory_space<vmem>>, %arg10: memref<1x1xf32, #tpu.memory_space<vmem>>, %arg11: memref<33x32xbf16, #tpu.memory_space<vmem>>, %arg12: memref<1x32xf32, #tpu.memory_space<vmem>>, %arg13: memref<32x33xbf16, #tpu.memory_space<vmem>>, %arg14: memref<1x33xf32, #tpu.memory_space<vmem>>, %arg15: memref<8x128xf32, #tpu.memory_space<vmem>>) attributes {dimension_semantics = [#tpu.dimension_semantics<parallel>], iteration_bounds = array<i64: 1>, scalar_prefetch = 0 : i64, scratch_operands = 0 : i64, tpu.core_type = #tpu.core_type<tc>, window_params = [{transform_indices = @transform_0, window_bounds = array<i64: 8>}, {transform_indices = @transform_1, window_bounds = array<i64: 8, 32>}, {pipeline_mode = #tpu.pipeline_mode<synchronous>, transform_indices = @transform_2, window_bounds = array<i64: 32, 8>}, {pipeline_mode = #tpu.pipeline_mode<synchronous>, transform_indices = @transform_3, window_bounds = array<i64: 8, 32>}, {pipeline_mode = #tpu.pipeline_mode<synchronous>, transform_indices = @transform_4, window_bounds = array<i64: 32, 32>}, {pipeline_mode = #tpu.pipeline_mode<synchronous>, transform_indices = @transform_5, window_bounds = array<i64: 1, 32>}, {pipeline_mode = #tpu.pipeline_mode<synchronous>, transform_indices = @transform_6, window_bounds = array<i64: 32, 64>}, {pipeline_mode = #tpu.pipeline_mode<synchronous>, transform_indices = @transform_7, window_bounds = array<i64: 1, 64>}, {pipeline_mode = #tpu.pipeline_mode<synchronous>, transform_indices = @transform_8, window_bounds = array<i64: 32, 1>}, {pipeline_mode = #tpu.pipeline_mode<synchronous>, transform_indices = @transform_9, window_bounds = array<i64: 1, 1>}, {pipeline_mode = #tpu.pipeline_mode<synchronous>, transform_indices = @transform_10, window_bounds = array<i64: 33, 32>}, {pipeline_mode = #tpu.pipeline_mode<synchronous>, transform_indices = @transform_11, window_bounds = array<i64: 1, 32>}, {pipeline_mode = #tpu.pipeline_mode<synchronous>, transform_indices = @transform_12, window_bounds = array<i64: 32, 33>}, {pipeline_mode = #tpu.pipeline_mode<synchronous>, transform_indices = @transform_13, window_bounds = array<i64: 1, 33>}, {transform_indices = @transform_14, window_bounds = array<i64: 8, 128>}]} {
    %c0 = arith.constant 0 : index
    %c0_0 = arith.constant 0 : index
    %0 = vector.load %arg2[%c0, %c0_0] : memref<8x32xf32, #tpu.memory_space<vmem>>, vector<8x32xf32>
    %1 = arith.truncf %0 : vector<8x32xf32> to vector<8x32xbf16>
    %c0_1 = arith.constant 0 : index
    %c0_2 = arith.constant 0 : index
    %2 = vector.load %arg5[%c0_1, %c0_2] : memref<32x32xbf16, #tpu.memory_space<vmem>>, vector<32x32xbf16>
    %cst = arith.constant dense<0.000000e+00> : vector<8x32xf32>
    %3 = tpu.matmul %1, %2, %cst {dimension_numbers = #tpu.dot_dimension_numbers<[1], [0], [0], [1], [0, 0, 1, 1], [], []>} : vector<8x32xbf16>, vector<32x32xbf16>, vector<8x32xf32> -> vector<8x32xf32>
    %c0_3 = arith.constant 0 : index
    %c0_4 = arith.constant 0 : index
    %4 = vector.load %arg6[%c0_3, %c0_4] : memref<1x32xf32, #tpu.memory_space<vmem>>, vector<1x32xf32>
    %5 = vector.broadcast %4 : vector<1x32xf32> to vector<8x32xf32>
    %6 = arith.addf %3, %5 : vector<8x32xf32>
    %7 = math.tanh %6 : vector<8x32xf32>
    %8 = arith.truncf %7 : vector<8x32xf32> to vector<8x32xbf16>
    %c0_5 = arith.constant 0 : index
    %c0_6 = arith.constant 0 : index
    %9 = vector.load %arg7[%c0_5, %c0_6] : memref<32x64xbf16, #tpu.memory_space<vmem>>, vector<32x64xbf16>
    %cst_7 = arith.constant dense<0.000000e+00> : vector<8x64xf32>
    %10 = tpu.matmul %8, %9, %cst_7 {dimension_numbers = #tpu.dot_dimension_numbers<[1], [0], [0], [1], [0, 0, 1, 1], [], []>} : vector<8x32xbf16>, vector<32x64xbf16>, vector<8x64xf32> -> vector<8x64xf32>
    %c0_8 = arith.constant 0 : index
    %c0_9 = arith.constant 0 : index
    %11 = vector.load %arg8[%c0_8, %c0_9] : memref<1x64xf32, #tpu.memory_space<vmem>>, vector<1x64xf32>
    %12 = vector.broadcast %11 : vector<1x64xf32> to vector<8x64xf32>
    %13 = arith.addf %10, %12 : vector<8x64xf32>
    %c0_10 = arith.constant 0 : index
    %c72 = arith.constant 72 : index
    %14 = vector.load %arg15[%c0_10, %c72] : memref<8x128xf32, #tpu.memory_space<vmem>>, vector<8x32xf32>
    tpu.vector_store %arg15[%c0_10, %c72], %7 {strides = array<i32>} : memref<8x128xf32, #tpu.memory_space<vmem>>, vector<8x32xf32>,
    %15 = vector.extract_strided_slice %13 {offsets = [0, 0], sizes = [8, 32], strides = [1, 1]} : vector<8x64xf32> to vector<8x32xf32>
    %16 = vector.extract_strided_slice %13 {offsets = [0, 32], sizes = [8, 32], strides = [1, 1]} : vector<8x64xf32> to vector<8x32xf32>
    %cst_11 = arith.constant 0.000000e+00 : f32
    %17 = vector.broadcast %cst_11 : f32 to vector<8x32xf32>
    %18 = arith.maximumf %16, %17 : vector<8x32xf32>
    %19 = vector.broadcast %cst_11 : f32 to vector<8x32xf32>
    %20 = arith.subf %16, %19 : vector<8x32xf32>
    %21 = arith.cmpf one, %20, %20 : vector<8x32xf32>
    %22 = vector.broadcast %cst_11 : f32 to vector<8x32xf32>
    %23 = arith.addf %16, %22 : vector<8x32xf32>
    %24 = math.absf %20 : vector<8x32xf32>
    %cst_12 = arith.constant 0.000000e+00 : f32
    %25 = vector.broadcast %cst_12 : f32 to vector<8x32xf32>
    %26 = arith.subf %25, %24 : vector<8x32xf32>
    %27 = math.exp %26 : vector<8x32xf32>
    %28 = math.log1p %27 : vector<8x32xf32>
    %29 = arith.addf %18, %28 : vector<8x32xf32>
    %30 = arith.select %21, %23, %29 : vector<8x32xi1>, vector<8x32xf32>
    %c0_13 = arith.constant 0 : index
    %c40 = arith.constant 40 : index
    %31 = vector.load %arg15[%c0_13, %c40] : memref<8x128xf32, #tpu.memory_space<vmem>>, vector<8x32xf32>
    tpu.vector_store %arg15[%c0_13, %c40], %30 {strides = array<i32>} : memref<8x128xf32, #tpu.memory_space<vmem>>, vector<8x32xf32>,
    %c0_14 = arith.constant 0 : index
    %c8 = arith.constant 8 : index
    %32 = vector.load %arg15[%c0_14, %c8] : memref<8x128xf32, #tpu.memory_space<vmem>>, vector<8x32xf32>
    tpu.vector_store %arg15[%c0_14, %c8], %15 {strides = array<i32>} : memref<8x128xf32, #tpu.memory_space<vmem>>, vector<8x32xf32>,
    %cst_15 = arith.constant 0.000000e+00 : f32
    %33 = vector.broadcast %cst_15 : f32 to vector<8x24xf32>
    %c0_16 = arith.constant 0 : index
    %c104 = arith.constant 104 : index
    %34 = vector.load %arg15[%c0_16, %c104] : memref<8x128xf32, #tpu.memory_space<vmem>>, vector<8x24xf32>
    tpu.vector_store %arg15[%c0_16, %c104], %33 {strides = array<i32>} : memref<8x128xf32, #tpu.memory_space<vmem>>, vector<8x24xf32>,
    %35 = arith.truncf %15 : vector<8x32xf32> to vector<8x32xbf16>
    %c0_17 = arith.constant 0 : index
    %c0_18 = arith.constant 0 : index
    %36 = vector.load %arg3[%c0_17, %c0_18] : memref<32x8xbf16, #tpu.memory_space<vmem>>, vector<32x8xbf16>
    %cst_19 = arith.constant dense<0.000000e+00> : vector<8x8xf32>
    %37 = tpu.matmul %35, %36, %cst_19 {dimension_numbers = #tpu.dot_dimension_numbers<[1], [0], [0], [1], [0, 0, 1, 1], [], []>} : vector<8x32xbf16>, vector<32x8xbf16>, vector<8x8xf32> -> vector<8x8xf32>
    %cst_20 = arith.constant 0.176776692 : f32
    %38 = vector.broadcast %cst_20 : f32 to vector<8x8xf32>
    %39 = arith.mulf %37, %38 : vector<8x8xf32>
    %cst_21 = arith.constant dense<0xFF800000> : vector<8xf32>
    %40 = vector.multi_reduction <maximumf>, %39, %cst_21 [1] : vector<8x8xf32> to vector<8xf32>
    %41 = vector.shape_cast %40 : vector<8xf32> to vector<8x1xf32>
    %42 = vector.broadcast %41 : vector<8x1xf32> to vector<8x8xf32>
    %43 = arith.subf %39, %42 : vector<8x8xf32>
    %44 = math.exp %43 : vector<8x8xf32>
    %cst_22 = arith.constant dense<0.000000e+00> : vector<8xf32>
    %45 = vector.multi_reduction <add>, %44, %cst_22 [1] : vector<8x8xf32> to vector<8xf32>
    %46 = vector.shape_cast %45 : vector<8xf32> to vector<8x1xf32>
    %47 = tpu.reciprocal %46 {approx = true} : vector<8x1xf32> -> vector<8x1xf32>
    %48 = vector.broadcast %47 : vector<8x1xf32> to vector<8x8xf32>
    %49 = arith.mulf %44, %48 : vector<8x8xf32>
    %50 = arith.truncf %49 : vector<8x8xf32> to vector<8x8xbf16>
    %c0_23 = arith.constant 0 : index
    %c0_24 = arith.constant 0 : index
    %51 = vector.load %arg4[%c0_23, %c0_24] : memref<8x32xbf16, #tpu.memory_space<vmem>>, vector<8x32xbf16>
    %cst_25 = arith.constant dense<0.000000e+00> : vector<8x32xf32>
    %52 = tpu.matmul %50, %51, %cst_25 {dimension_numbers = #tpu.dot_dimension_numbers<[1], [0], [0], [1], [0, 0, 1, 1], [], []>} : vector<8x8xbf16>, vector<8x32xbf16>, vector<8x32xf32> -> vector<8x32xf32>
    %53 = arith.addf %15, %52 : vector<8x32xf32>
    %54 = arith.truncf %53 : vector<8x32xf32> to vector<8x32xbf16>
    %c0_26 = arith.constant 0 : index
    %c0_27 = arith.constant 0 : index
    %55 = vector.load %arg9[%c0_26, %c0_27] : memref<32x1xbf16, #tpu.memory_space<vmem>>, vector<32x1xbf16>
    %cst_28 = arith.constant dense<0.000000e+00> : vector<8x1xf32>
    %56 = tpu.matmul %54, %55, %cst_28 {dimension_numbers = #tpu.dot_dimension_numbers<[1], [0], [0], [1], [0, 0, 1, 1], [], []>} : vector<8x32xbf16>, vector<32x1xbf16>, vector<8x1xf32> -> vector<8x1xf32>
    %c0_29 = arith.constant 0 : index
    %c0_30 = arith.constant 0 : index
    %57 = vector.load %arg10[%c0_29, %c0_30] : memref<1x1xf32, #tpu.memory_space<vmem>>, vector<1x1xf32>
    %58 = vector.broadcast %57 : vector<1x1xf32> to vector<8x1xf32>
    %59 = arith.addf %56, %58 : vector<8x1xf32>
    %60 = tpu.concatenate %53, %59 in 1 : vector<8x32xf32>, vector<8x1xf32> -> vector<8x33xf32>
    %c0_31 = arith.constant 0 : index
    %c0_32 = arith.constant 0 : index
    %61 = vector.load %arg11[%c0_31, %c0_32] : memref<33x32xbf16, #tpu.memory_space<vmem>>, vector<33x32xbf16>
    %c0_33 = arith.constant 0 : index
    %c0_34 = arith.constant 0 : index
    %62 = vector.load %arg13[%c0_33, %c0_34] : memref<32x33xbf16, #tpu.memory_space<vmem>>, vector<32x33xbf16>
    %c0_35 = arith.constant 0 : index
    %c0_36 = arith.constant 0 : index
    %63 = vector.load %arg12[%c0_35, %c0_36] : memref<1x32xf32, #tpu.memory_space<vmem>>, vector<1x32xf32>
    %c0_37 = arith.constant 0 : index
    %c0_38 = arith.constant 0 : index
    %64 = vector.load %arg14[%c0_37, %c0_38] : memref<1x33xf32, #tpu.memory_space<vmem>>, vector<1x33xf32>
    %c0_39 = arith.constant 0 : index
    %65 = memref.load %arg1[%c0_39] : memref<8xf32, #tpu.memory_space<smem>>
    %66 = arith.truncf %60 : vector<8x33xf32> to vector<8x33xbf16>
    %cst_40 = arith.constant dense<0.000000e+00> : vector<8x32xf32>
    %67 = tpu.matmul %66, %61, %cst_40 {dimension_numbers = #tpu.dot_dimension_numbers<[1], [0], [0], [1], [0, 0, 1, 1], [], []>} : vector<8x33xbf16>, vector<33x32xbf16>, vector<8x32xf32> -> vector<8x32xf32>
    %68 = vector.broadcast %63 : vector<1x32xf32> to vector<8x32xf32>
    %69 = arith.addf %67, %68 : vector<8x32xf32>
    %70 = math.tanh %69 : vector<8x32xf32>
    %71 = arith.truncf %70 : vector<8x32xf32> to vector<8x32xbf16>
    %cst_41 = arith.constant dense<0.000000e+00> : vector<8x33xf32>
    %72 = tpu.matmul %71, %62, %cst_41 {dimension_numbers = #tpu.dot_dimension_numbers<[1], [0], [0], [1], [0, 0, 1, 1], [], []>} : vector<8x32xbf16>, vector<32x33xbf16>, vector<8x33xf32> -> vector<8x33xf32>
    %73 = vector.broadcast %64 : vector<1x33xf32> to vector<8x33xf32>
    %74 = arith.addf %72, %73 : vector<8x33xf32>
    %75 = vector.broadcast %65 : f32 to vector<8x33xf32>
    %76 = arith.mulf %75, %74 : vector<8x33xf32>
    %77 = arith.addf %60, %76 : vector<8x33xf32>
    %78 = vector.extract_strided_slice %77 {offsets = [0, 32], sizes = [8, 1], strides = [1, 1]} : vector<8x33xf32> to vector<8x1xf32>
    %c0_42 = arith.constant 0 : index
    %c0_43 = arith.constant 0 : index
    %79 = vector.load %arg15[%c0_42, %c0_43] : memref<8x128xf32, #tpu.memory_space<vmem>>, vector<8x1xf32>
    tpu.vector_store %arg15[%c0_42, %c0_43], %78 {strides = array<i32>} : memref<8x128xf32, #tpu.memory_space<vmem>>, vector<8x1xf32>,
    %c1 = arith.constant 1 : index
    %80 = memref.load %arg1[%c1] : memref<8xf32, #tpu.memory_space<smem>>
    %81 = arith.truncf %77 : vector<8x33xf32> to vector<8x33xbf16>
    %cst_44 = arith.constant dense<0.000000e+00> : vector<8x32xf32>
    %82 = tpu.matmul %81, %61, %cst_44 {dimension_numbers = #tpu.dot_dimension_numbers<[1], [0], [0], [1], [0, 0, 1, 1], [], []>} : vector<8x33xbf16>, vector<33x32xbf16>, vector<8x32xf32> -> vector<8x32xf32>
    %83 = vector.broadcast %63 : vector<1x32xf32> to vector<8x32xf32>
    %84 = arith.addf %82, %83 : vector<8x32xf32>
    %85 = math.tanh %84 : vector<8x32xf32>
    %86 = arith.truncf %85 : vector<8x32xf32> to vector<8x32xbf16>
    %cst_45 = arith.constant dense<0.000000e+00> : vector<8x33xf32>
    %87 = tpu.matmul %86, %62, %cst_45 {dimension_numbers = #tpu.dot_dimension_numbers<[1], [0], [0], [1], [0, 0, 1, 1], [], []>} : vector<8x32xbf16>, vector<32x33xbf16>, vector<8x33xf32> -> vector<8x33xf32>
    %88 = vector.broadcast %64 : vector<1x33xf32> to vector<8x33xf32>
    %89 = arith.addf %87, %88 : vector<8x33xf32>
    %90 = vector.broadcast %80 : f32 to vector<8x33xf32>
    %91 = arith.mulf %90, %89 : vector<8x33xf32>
    %92 = arith.addf %77, %91 : vector<8x33xf32>
    %93 = vector.extract_strided_slice %92 {offsets = [0, 32], sizes = [8, 1], strides = [1, 1]} : vector<8x33xf32> to vector<8x1xf32>
    %c0_46 = arith.constant 0 : index
    %c1_47 = arith.constant 1 : index
    %94 = vector.load %arg15[%c0_46, %c1_47] : memref<8x128xf32, #tpu.memory_space<vmem>>, vector<8x1xf32>
    tpu.vector_store %arg15[%c0_46, %c1_47], %93 {strides = array<i32>} : memref<8x128xf32, #tpu.memory_space<vmem>>, vector<8x1xf32>,
    %c2 = arith.constant 2 : index
    %95 = memref.load %arg1[%c2] : memref<8xf32, #tpu.memory_space<smem>>
    %96 = arith.truncf %92 : vector<8x33xf32> to vector<8x33xbf16>
    %cst_48 = arith.constant dense<0.000000e+00> : vector<8x32xf32>
    %97 = tpu.matmul %96, %61, %cst_48 {dimension_numbers = #tpu.dot_dimension_numbers<[1], [0], [0], [1], [0, 0, 1, 1], [], []>} : vector<8x33xbf16>, vector<33x32xbf16>, vector<8x32xf32> -> vector<8x32xf32>
    %98 = vector.broadcast %63 : vector<1x32xf32> to vector<8x32xf32>
    %99 = arith.addf %97, %98 : vector<8x32xf32>
    %100 = math.tanh %99 : vector<8x32xf32>
    %101 = arith.truncf %100 : vector<8x32xf32> to vector<8x32xbf16>
    %cst_49 = arith.constant dense<0.000000e+00> : vector<8x33xf32>
    %102 = tpu.matmul %101, %62, %cst_49 {dimension_numbers = #tpu.dot_dimension_numbers<[1], [0], [0], [1], [0, 0, 1, 1], [], []>} : vector<8x32xbf16>, vector<32x33xbf16>, vector<8x33xf32> -> vector<8x33xf32>
    %103 = vector.broadcast %64 : vector<1x33xf32> to vector<8x33xf32>
    %104 = arith.addf %102, %103 : vector<8x33xf32>
    %105 = vector.broadcast %95 : f32 to vector<8x33xf32>
    %106 = arith.mulf %105, %104 : vector<8x33xf32>
    %107 = arith.addf %92, %106 : vector<8x33xf32>
    %108 = vector.extract_strided_slice %107 {offsets = [0, 32], sizes = [8, 1], strides = [1, 1]} : vector<8x33xf32> to vector<8x1xf32>
    %c0_50 = arith.constant 0 : index
    %c2_51 = arith.constant 2 : index
    %109 = vector.load %arg15[%c0_50, %c2_51] : memref<8x128xf32, #tpu.memory_space<vmem>>, vector<8x1xf32>
    tpu.vector_store %arg15[%c0_50, %c2_51], %108 {strides = array<i32>} : memref<8x128xf32, #tpu.memory_space<vmem>>, vector<8x1xf32>,
    %c3 = arith.constant 3 : index
    %110 = memref.load %arg1[%c3] : memref<8xf32, #tpu.memory_space<smem>>
    %111 = arith.truncf %107 : vector<8x33xf32> to vector<8x33xbf16>
    %cst_52 = arith.constant dense<0.000000e+00> : vector<8x32xf32>
    %112 = tpu.matmul %111, %61, %cst_52 {dimension_numbers = #tpu.dot_dimension_numbers<[1], [0], [0], [1], [0, 0, 1, 1], [], []>} : vector<8x33xbf16>, vector<33x32xbf16>, vector<8x32xf32> -> vector<8x32xf32>
    %113 = vector.broadcast %63 : vector<1x32xf32> to vector<8x32xf32>
    %114 = arith.addf %112, %113 : vector<8x32xf32>
    %115 = math.tanh %114 : vector<8x32xf32>
    %116 = arith.truncf %115 : vector<8x32xf32> to vector<8x32xbf16>
    %cst_53 = arith.constant dense<0.000000e+00> : vector<8x33xf32>
    %117 = tpu.matmul %116, %62, %cst_53 {dimension_numbers = #tpu.dot_dimension_numbers<[1], [0], [0], [1], [0, 0, 1, 1], [], []>} : vector<8x32xbf16>, vector<32x33xbf16>, vector<8x33xf32> -> vector<8x33xf32>
    %118 = vector.broadcast %64 : vector<1x33xf32> to vector<8x33xf32>
    %119 = arith.addf %117, %118 : vector<8x33xf32>
    %120 = vector.broadcast %110 : f32 to vector<8x33xf32>
    %121 = arith.mulf %120, %119 : vector<8x33xf32>
    %122 = arith.addf %107, %121 : vector<8x33xf32>
    %123 = vector.extract_strided_slice %122 {offsets = [0, 32], sizes = [8, 1], strides = [1, 1]} : vector<8x33xf32> to vector<8x1xf32>
    %c0_54 = arith.constant 0 : index
    %c3_55 = arith.constant 3 : index
    %124 = vector.load %arg15[%c0_54, %c3_55] : memref<8x128xf32, #tpu.memory_space<vmem>>, vector<8x1xf32>
    tpu.vector_store %arg15[%c0_54, %c3_55], %123 {strides = array<i32>} : memref<8x128xf32, #tpu.memory_space<vmem>>, vector<8x1xf32>,
    %c4 = arith.constant 4 : index
    %125 = memref.load %arg1[%c4] : memref<8xf32, #tpu.memory_space<smem>>
    %126 = arith.truncf %122 : vector<8x33xf32> to vector<8x33xbf16>
    %cst_56 = arith.constant dense<0.000000e+00> : vector<8x32xf32>
    %127 = tpu.matmul %126, %61, %cst_56 {dimension_numbers = #tpu.dot_dimension_numbers<[1], [0], [0], [1], [0, 0, 1, 1], [], []>} : vector<8x33xbf16>, vector<33x32xbf16>, vector<8x32xf32> -> vector<8x32xf32>
    %128 = vector.broadcast %63 : vector<1x32xf32> to vector<8x32xf32>
    %129 = arith.addf %127, %128 : vector<8x32xf32>
    %130 = math.tanh %129 : vector<8x32xf32>
    %131 = arith.truncf %130 : vector<8x32xf32> to vector<8x32xbf16>
    %cst_57 = arith.constant dense<0.000000e+00> : vector<8x33xf32>
    %132 = tpu.matmul %131, %62, %cst_57 {dimension_numbers = #tpu.dot_dimension_numbers<[1], [0], [0], [1], [0, 0, 1, 1], [], []>} : vector<8x32xbf16>, vector<32x33xbf16>, vector<8x33xf32> -> vector<8x33xf32>
    %133 = vector.broadcast %64 : vector<1x33xf32> to vector<8x33xf32>
    %134 = arith.addf %132, %133 : vector<8x33xf32>
    %135 = vector.broadcast %125 : f32 to vector<8x33xf32>
    %136 = arith.mulf %135, %134 : vector<8x33xf32>
    %137 = arith.addf %122, %136 : vector<8x33xf32>
    %138 = vector.extract_strided_slice %137 {offsets = [0, 32], sizes = [8, 1], strides = [1, 1]} : vector<8x33xf32> to vector<8x1xf32>
    %c0_58 = arith.constant 0 : index
    %c4_59 = arith.constant 4 : index
    %139 = vector.load %arg15[%c0_58, %c4_59] : memref<8x128xf32, #tpu.memory_space<vmem>>, vector<8x1xf32>
    tpu.vector_store %arg15[%c0_58, %c4_59], %138 {strides = array<i32>} : memref<8x128xf32, #tpu.memory_space<vmem>>, vector<8x1xf32>,
    %c5 = arith.constant 5 : index
    %140 = memref.load %arg1[%c5] : memref<8xf32, #tpu.memory_space<smem>>
    %141 = arith.truncf %137 : vector<8x33xf32> to vector<8x33xbf16>
    %cst_60 = arith.constant dense<0.000000e+00> : vector<8x32xf32>
    %142 = tpu.matmul %141, %61, %cst_60 {dimension_numbers = #tpu.dot_dimension_numbers<[1], [0], [0], [1], [0, 0, 1, 1], [], []>} : vector<8x33xbf16>, vector<33x32xbf16>, vector<8x32xf32> -> vector<8x32xf32>
    %143 = vector.broadcast %63 : vector<1x32xf32> to vector<8x32xf32>
    %144 = arith.addf %142, %143 : vector<8x32xf32>
    %145 = math.tanh %144 : vector<8x32xf32>
    %146 = arith.truncf %145 : vector<8x32xf32> to vector<8x32xbf16>
    %cst_61 = arith.constant dense<0.000000e+00> : vector<8x33xf32>
    %147 = tpu.matmul %146, %62, %cst_61 {dimension_numbers = #tpu.dot_dimension_numbers<[1], [0], [0], [1], [0, 0, 1, 1], [], []>} : vector<8x32xbf16>, vector<32x33xbf16>, vector<8x33xf32> -> vector<8x33xf32>
    %148 = vector.broadcast %64 : vector<1x33xf32> to vector<8x33xf32>
    %149 = arith.addf %147, %148 : vector<8x33xf32>
    %150 = vector.broadcast %140 : f32 to vector<8x33xf32>
    %151 = arith.mulf %150, %149 : vector<8x33xf32>
    %152 = arith.addf %137, %151 : vector<8x33xf32>
    %153 = vector.extract_strided_slice %152 {offsets = [0, 32], sizes = [8, 1], strides = [1, 1]} : vector<8x33xf32> to vector<8x1xf32>
    %c0_62 = arith.constant 0 : index
    %c5_63 = arith.constant 5 : index
    %154 = vector.load %arg15[%c0_62, %c5_63] : memref<8x128xf32, #tpu.memory_space<vmem>>, vector<8x1xf32>
    tpu.vector_store %arg15[%c0_62, %c5_63], %153 {strides = array<i32>} : memref<8x128xf32, #tpu.memory_space<vmem>>, vector<8x1xf32>,
    %c6 = arith.constant 6 : index
    %155 = memref.load %arg1[%c6] : memref<8xf32, #tpu.memory_space<smem>>
    %156 = arith.truncf %152 : vector<8x33xf32> to vector<8x33xbf16>
    %cst_64 = arith.constant dense<0.000000e+00> : vector<8x32xf32>
    %157 = tpu.matmul %156, %61, %cst_64 {dimension_numbers = #tpu.dot_dimension_numbers<[1], [0], [0], [1], [0, 0, 1, 1], [], []>} : vector<8x33xbf16>, vector<33x32xbf16>, vector<8x32xf32> -> vector<8x32xf32>
    %158 = vector.broadcast %63 : vector<1x32xf32> to vector<8x32xf32>
    %159 = arith.addf %157, %158 : vector<8x32xf32>
    %160 = math.tanh %159 : vector<8x32xf32>
    %161 = arith.truncf %160 : vector<8x32xf32> to vector<8x32xbf16>
    %cst_65 = arith.constant dense<0.000000e+00> : vector<8x33xf32>
    %162 = tpu.matmul %161, %62, %cst_65 {dimension_numbers = #tpu.dot_dimension_numbers<[1], [0], [0], [1], [0, 0, 1, 1], [], []>} : vector<8x32xbf16>, vector<32x33xbf16>, vector<8x33xf32> -> vector<8x33xf32>
    %163 = vector.broadcast %64 : vector<1x33xf32> to vector<8x33xf32>
    %164 = arith.addf %162, %163 : vector<8x33xf32>
    %165 = vector.broadcast %155 : f32 to vector<8x33xf32>
    %166 = arith.mulf %165, %164 : vector<8x33xf32>
    %167 = arith.addf %152, %166 : vector<8x33xf32>
    %168 = vector.extract_strided_slice %167 {offsets = [0, 32], sizes = [8, 1], strides = [1, 1]} : vector<8x33xf32> to vector<8x1xf32>
    %c0_66 = arith.constant 0 : index
    %c6_67 = arith.constant 6 : index
    %169 = vector.load %arg15[%c0_66, %c6_67] : memref<8x128xf32, #tpu.memory_space<vmem>>, vector<8x1xf32>
    tpu.vector_store %arg15[%c0_66, %c6_67], %168 {strides = array<i32>} : memref<8x128xf32, #tpu.memory_space<vmem>>, vector<8x1xf32>,
    %c7 = arith.constant 7 : index
    %170 = memref.load %arg1[%c7] : memref<8xf32, #tpu.memory_space<smem>>
    %171 = arith.truncf %167 : vector<8x33xf32> to vector<8x33xbf16>
    %cst_68 = arith.constant dense<0.000000e+00> : vector<8x32xf32>
    %172 = tpu.matmul %171, %61, %cst_68 {dimension_numbers = #tpu.dot_dimension_numbers<[1], [0], [0], [1], [0, 0, 1, 1], [], []>} : vector<8x33xbf16>, vector<33x32xbf16>, vector<8x32xf32> -> vector<8x32xf32>
    %173 = vector.broadcast %63 : vector<1x32xf32> to vector<8x32xf32>
    %174 = arith.addf %172, %173 : vector<8x32xf32>
    %175 = math.tanh %174 : vector<8x32xf32>
    %176 = arith.truncf %175 : vector<8x32xf32> to vector<8x32xbf16>
    %cst_69 = arith.constant dense<0.000000e+00> : vector<8x33xf32>
    %177 = tpu.matmul %176, %62, %cst_69 {dimension_numbers = #tpu.dot_dimension_numbers<[1], [0], [0], [1], [0, 0, 1, 1], [], []>} : vector<8x32xbf16>, vector<32x33xbf16>, vector<8x33xf32> -> vector<8x33xf32>
    %178 = vector.broadcast %64 : vector<1x33xf32> to vector<8x33xf32>
    %179 = arith.addf %177, %178 : vector<8x33xf32>
    %180 = vector.broadcast %170 : f32 to vector<8x33xf32>
    %181 = arith.mulf %180, %179 : vector<8x33xf32>
    %182 = arith.addf %167, %181 : vector<8x33xf32>
    %183 = vector.extract_strided_slice %182 {offsets = [0, 32], sizes = [8, 1], strides = [1, 1]} : vector<8x33xf32> to vector<8x1xf32>
    %c0_70 = arith.constant 0 : index
    %c7_71 = arith.constant 7 : index
    %184 = vector.load %arg15[%c0_70, %c7_71] : memref<8x128xf32, #tpu.memory_space<vmem>>, vector<8x1xf32>
    tpu.vector_store %arg15[%c0_70, %c7_71], %183 {strides = array<i32>} : memref<8x128xf32, #tpu.memory_space<vmem>>, vector<8x1xf32>,
    return
  }
  func.func @transform_0(%arg0: i32) -> i32 {
    %c0_i32 = arith.constant 0 : i32
    %c0_i32_0 = arith.constant 0 : i32
    return %c0_i32 : i32
  }
  func.func @transform_1(%arg0: i32) -> (i32, i32) {
    %c0_i32 = arith.constant 0 : i32
    %c0_i32_0 = arith.constant 0 : i32
    return %arg0, %c0_i32 : i32, i32
  }
  func.func @transform_2(%arg0: i32) -> (i32, i32) {
    %c0_i32 = arith.constant 0 : i32
    %c0_i32_0 = arith.constant 0 : i32
    %c0_i32_1 = arith.constant 0 : i32
    return %c0_i32, %c0_i32_0 : i32, i32
  }
  func.func @transform_3(%arg0: i32) -> (i32, i32) {
    %c0_i32 = arith.constant 0 : i32
    %c0_i32_0 = arith.constant 0 : i32
    %c0_i32_1 = arith.constant 0 : i32
    return %c0_i32, %c0_i32_0 : i32, i32
  }
  func.func @transform_4(%arg0: i32) -> (i32, i32) {
    %c0_i32 = arith.constant 0 : i32
    %c0_i32_0 = arith.constant 0 : i32
    %c0_i32_1 = arith.constant 0 : i32
    return %c0_i32, %c0_i32_0 : i32, i32
  }
  func.func @transform_5(%arg0: i32) -> (i32, i32) {
    %c0_i32 = arith.constant 0 : i32
    %c0_i32_0 = arith.constant 0 : i32
    %c0_i32_1 = arith.constant 0 : i32
    return %c0_i32, %c0_i32_0 : i32, i32
  }
  func.func @transform_6(%arg0: i32) -> (i32, i32) {
    %c0_i32 = arith.constant 0 : i32
    %c0_i32_0 = arith.constant 0 : i32
    %c0_i32_1 = arith.constant 0 : i32
    return %c0_i32, %c0_i32_0 : i32, i32
  }
  func.func @transform_7(%arg0: i32) -> (i32, i32) {
    %c0_i32 = arith.constant 0 : i32
    %c0_i32_0 = arith.constant 0 : i32
    %c0_i32_1 = arith.constant 0 : i32
    return %c0_i32, %c0_i32_0 : i32, i32
  }
  func.func @transform_8(%arg0: i32) -> (i32, i32) {
    %c0_i32 = arith.constant 0 : i32
    %c0_i32_0 = arith.constant 0 : i32
    %c0_i32_1 = arith.constant 0 : i32
    return %c0_i32, %c0_i32_0 : i32, i32
  }
  func.func @transform_9(%arg0: i32) -> (i32, i32) {
    %c0_i32 = arith.constant 0 : i32
    %c0_i32_0 = arith.constant 0 : i32
    %c0_i32_1 = arith.constant 0 : i32
    return %c0_i32, %c0_i32_0 : i32, i32
  }
  func.func @transform_10(%arg0: i32) -> (i32, i32) {
    %c0_i32 = arith.constant 0 : i32
    %c0_i32_0 = arith.constant 0 : i32
    %c0_i32_1 = arith.constant 0 : i32
    return %c0_i32, %c0_i32_0 : i32, i32
  }
  func.func @transform_11(%arg0: i32) -> (i32, i32) {
    %c0_i32 = arith.constant 0 : i32
    %c0_i32_0 = arith.constant 0 : i32
    %c0_i32_1 = arith.constant 0 : i32
    return %c0_i32, %c0_i32_0 : i32, i32
  }
  func.func @transform_12(%arg0: i32) -> (i32, i32) {
    %c0_i32 = arith.constant 0 : i32
    %c0_i32_0 = arith.constant 0 : i32
    %c0_i32_1 = arith.constant 0 : i32
    return %c0_i32, %c0_i32_0 : i32, i32
  }
  func.func @transform_13(%arg0: i32) -> (i32, i32) {
    %c0_i32 = arith.constant 0 : i32
    %c0_i32_0 = arith.constant 0 : i32
    %c0_i32_1 = arith.constant 0 : i32
    return %c0_i32, %c0_i32_0 : i32, i32
  }
  func.func @transform_14(%arg0: i32) -> (i32, i32) {
    %c0_i32 = arith.constant 0 : i32
    %c0_i32_0 = arith.constant 0 : i32
    return %arg0, %c0_i32 : i32, i32
  }
}

</mosaic_0001>

<bundles_post_ra>
// kernel: tpu_custom_call.1
= control target key start
LH: loop header
LB: loop body
LE: loop exit
PB: predicated region body
PF: predicated region fallthrough
CT: control target
= control target key end

     0   :  { %s2085_s0 = inlined_call_operand.vmem [shape: f32[8], index: 0, kind: input, shape index: {}]   ;;  %s2086_s1 = inlined_call_operand.vmem [shape: f32[8,32], index: 1, kind: input, shape index: {}]   ;;  %s2087_s2 = inlined_call_operand.vmem [shape: bf16[32,8], index: 2, kind: input, shape index: {}]   ;;  %s2088_s3 = inlined_call_operand.hbm [shape: bf16[8,32], index: 3, kind: input, shape index: {}]   ;;  %s2089_s4 = inlined_call_operand.vmem [shape: bf16[32,32], index: 4, kind: input, shape index: {}]   ;;  %s2090_s5 = inlined_call_operand.vmem [shape: f32[1,32], index: 5, kind: input, shape index: {}]   ;;  %s2091_s6 = inlined_call_operand.vmem [shape: bf16[32,64], index: 6, kind: input, shape index: {}]   ;;  %s2092_s7 = inlined_call_operand.vmem [shape: f32[1,64], index: 7, kind: input, shape index: {}]   ;;  %s2093_s8 = inlined_call_operand.vmem [shape: bf16[32,1], index: 8, kind: input, shape index: {}]   ;;  %s2094_s9 = inlined_call_operand.<no memory space> [shape: f32[1,1], index: 9, kind: input, shape index: {}]   ;;  %s2095_s10 = inlined_call_operand.vmem [shape: bf16[33,32], index: 10, kind: input, shape index: {}]   ;;  %s2096_s11 = inlined_call_operand.vmem [shape: f32[1,32], index: 11, kind: input, shape index: {}]   ;;  %s2097_s12 = inlined_call_operand.vmem [shape: bf16[32,33], index: 12, kind: input, shape index: {}]   ;;  %s2098_s13 = inlined_call_operand.vmem [shape: f32[1,33], index: 13, kind: input, shape index: {}]   ;;  %s2099_s14 = inlined_call_operand.hbm [shape: f32[8,128], index: 14, kind: output, shape index: {}]  }
   0x1   :  { %v19_v0 = vstv %s2094_s9 }
   0x2   :  { %20 = vst [vmem:[#allocation2] sm:$0x1] %v19_v0 }
   0x3   :  { %21 = vsyncpa [#allocation6], 0 }
   0x4   :  { %22 = vsyncpa [#allocation4], 0 }
   0x5   :  { %23 = vsyncpa [#allocation5], 0  ;;  %s30_s17 = sshll.u32 %s2085_s0, 4  ;;  %s31_s17 = int_to_ptr.vmem [resolvable:$true] %s30_s17 }
   0x6   :  { %s1665_s18 = scalar_lea.vmem %s31_s17, 16  ;;  %p1670_p1 = scmp.lt.s32.totalorder %s31_s17, %s31_s17 }
   0x7   :  { %p1666_p0 = scmp.ne.s32.totalorder %s31_s17, %s1665_s18  ;;  %p1671_p2 = scmp.lt.s32.totalorder %s1665_s18, %s1665_s18 }
   0x9   :  { %p1672_p3 = por %p1671_p2, %p1670_p1 }
   0xb   :  { %p1673_p4 = pnand %p1672_p3, %p1666_p0 }
   0xd   :  { %1676 = shalt.err (!%p1673_p4)
}
   0xe   :  { %s1723_s19 = smov [#allocation3]   ;;  %s1724_s20 = smov [#allocation7]  }
   0xf   :  { %33 = dma.vmem_to_smem %s31_s17, 16, %s1723_s19, [#allocation6]  }
  0x10   :  { %s44_s9 = sshll.u32 %s1724_s20, 4  ;;  %s45_s9 = int_to_ptr.vmem [resolvable:$true] %s44_s9 }
  0x11   :  { %s1685_s21 = scalar_lea.vmem %s45_s9, 64  ;;  %p1690_p6 = scmp.lt.s32.totalorder %s45_s9, %s45_s9 }
  0x12   :  { %p1686_p5 = scmp.ne.s32.totalorder %s45_s9, %s1685_s21  ;;  %p1691_p7 = scmp.lt.s32.totalorder %s1685_s21, %s1685_s21 }
  0x14   :  { %p1692_p8 = por %p1691_p7, %p1690_p6 }
  0x16   :  { %p1693_p9 = pnand %p1692_p8, %p1686_p5 }
  0x18   :  { %1696 = shalt.err (!%p1693_p9)
}
  0x19   :  { %47 = dma.hbm_to_vmem [thread:$0]  %s2088_s3, 64, %s45_s9, [#allocation4]  }
  0x1a   :  { %1717 = dma.done.wait [#allocation6], 16  }
  0x1b   :  { %1718 = vsyncadd [#allocation6], 4294967280 }
  0x1c   :  { %1719 = dma.done.wait [#allocation4], 64  }
  0x1d   :  { %1720 = vsyncadd [#allocation4], 4294967232 }
  0x1e   :  { %74 = sfence }
  0x1f   :  { %v1626_v1 = vld [vmem:[%s2089_s4 + $0x8] sm:$0xff]   ;;  %v1725_v2 = vmov 0.0   ;;  %v1627_v3 = vld [vmem:[%s2089_s4] sm:$0xff]   ;;  %vm1726_vm0 = vmmov 0   ;;  %vm101_vm1 = vcmask 261120   ;;  %vm312_vm2 = vcmask 64512  }
  0x20   :  { %1427 = vmatprep.subr.bf16.mxu0 %v1725_v2  ;;  %1435 = vmatprep.subr.bf16.mxu1 %v1725_v2  ;;  %v76_v4 = vld [vmem:[%s2086_s1] sm:$0xff]  ;;  %v1628_v6 = vld [vmem:[%s2091_s6 + $0x8] sm:$0xff]   ;;  %vm329_vm4 = vcmask 1043456   ;;  %vm484_vm6 = vcmask 1040384   ;;  %s1729_s26 = smov 32   ;;  %s1730_s3 = smov 72  }
  0x21   :  { %1428 = vmatpush3.bf16.msra.mxu0 %v1626_v1  ;;  %1431 = vmatprep.mubr.msk.bf16.mxu0 %vm1726_vm0, %v1725_v2  ;;  %v77_v5 = vpack.c.bf16 %v76_v4, %v76_v4  ;;  %v1629_v7 = vld [vmem:[%s2091_s6] sm:$0xff]   ;;  %v1630_v8 = vld [vmem:[%s2087_s2 + $0x8] sm:$0xff]   ;;  %v1634_v1 = vld [vmem:[%s2095_s10 + $0x10] ss:$0 sps:$4 sm:$0x11]   ;;  %vm480_vm7 = vcmask 269312  }
  0x22   :  { %1429 = vmatprep.subr.bf16.mxu0 %v1725_v2  ;;  %1439 = vmatprep.mubr.msk.bf16.mxu1 %vm1726_vm0, %v1725_v2  ;;  %v1311_v9 = vld [vmem:[%s2090_s5] ss:$0 sm:$0xff]  ;;  %v325_v47 = vld [vmem:[#allocation7] sm:$0xf]  ;;  %v1632_v53 = vld [vmem:[%s2093_s8 + $0x8] sm:$0xff]   ;;  %vm217_vm8 = vcmask 851520  }
  0x23   :  { %1436 = vmatpush3.bf16.msra.mxu1 %v1628_v6  ;;  %v1631_v17 = vld [vmem:[%s2087_s2] sm:$0xff]   ;;  %v331_v49 = vsel %vm329_vm4, %v325_v47, 0  ;;  %s1727_s2 = smov 8   ;;  %v1913_v6 = vld [vmem:[%s2095_s10 + $0x8] sm:$0xff]   ;;  %vm241_vm9 = vcmask 589120   ;;  %vm247_vm10 = vcmask 326720  }
  0x24   :  { %1437 = vmatprep.subr.bf16.mxu1 %v1725_v2  ;;  %v1315_v18 = vld [vmem:[%s2092_s7] ss:$0 sm:$0xff]  ;;  %vm249_vm11 = vcmask 1048384   ;;  %s1731_s15 = smov 96   ;;  %vm600_vm12 = vcmask 7168   ;;  %s1732_s16 = smov 97  }
  0x25   :  { %1430 = vmatpush3.bf16.msra.mxu0 %v1627_v3  ;;  %v1633_v58 = vld [vmem:[%s2093_s8] sm:$0xff]   ;;  %v1728_v3 = vmov 0   ;;  %vm699_vm13 = vcmask 15368   ;;  %s1339_s17 = sld [smem:[#allocation3 + $0x2]]  ;;  %s1733_s6 = smov 98   ;;  %vm798_vm14 = vcmask 23568  }
  0x26   :  { %1443 = vmatprep.subr.bf16.mxu0 %v1725_v2  ;;  %v486_v4 = vsel %vm484_vm6, 65535, %v1728_v3  ;;  %s1342_s18 = sld [smem:[#allocation3 + $0x3]]  ;;  %s1734_s5 = smov 99   ;;  %vm897_vm15 = vcmask 31768   ;;  %vm1293_vm4 = vcmask 64568  }
  0x27   :  { %1438 = vmatpush3.bf16.msra.mxu1 %v1629_v7  ;;  %v1921_v7 = vld [vmem:[%s2095_s10] sm:$0xff]   ;;  %s1345_s19 = sld [smem:[#allocation3 + $0x4]]  ;;  %s1736_s20 = smov 101  }
  0x28   :  { %1432 = vmatmul.mubr.msk.bf16.vlgmr.msra.gmra.mxu0 %vm101_vm1, %v77_v5  ;;  %1451 = vmatprep.subr.bf16.mxu1 %v1725_v2  ;;  %v1907_v5 = vand.u32 %v1634_v1, %v486_v4  ;;  %s1348_s7 = sld [smem:[#allocation3 + $0x5]]  ;;  %s1737_s21 = smov 102  }
  0x29   :  { %1447 = vmatprep.mubr.msk.bf16.mxu0 %vm1726_vm0, %v1725_v2  ;;  %1444 = vmatpush3.bf16.msra.mxu0 %v1630_v8  ;;  %v1323_v8 = vld [vmem:[#allocation2] ss:$0 sm:$0xff]  ;;  %s1351_s9 = sld [smem:[#allocation3 + $0x6]]  ;;  %s1738_s22 = smov 103  }
  0x2a   :  { %1445 = vmatprep.subr.bf16.mxu0 %v1725_v2  ;;  %s1354_s0 = sld [smem:[#allocation3 + $0x7]]  ;;  %s1739_s8 = smov [#allocation8]  }
  0x2b   :  { %v791_v3 = vstv %s1339_s17  ;;  %s1301_s23 = sshll.u32 %s1739_s8, 4  ;;  %s1302_s23 = int_to_ptr.vmem [resolvable:$true] %s1301_s23 }
  0x2c   :  { %s1697_s24 = scalar_lea.vmem %s1302_s23, 128  ;;  %p1702_p11 = scmp.lt.s32.totalorder %s1302_s23, %s1302_s23 }
  0x2d   :  { %1446 = vmatpush3.bf16.msra.mxu0 %v1631_v17  ;;  %p1698_p10 = scmp.ne.s32.totalorder %s1302_s23, %s1697_s24  ;;  %p1703_p12 = scmp.lt.s32.totalorder %s1697_s24, %s1697_s24 }
  0x2e   :  { %1457 = vmatprep.subr.bf16.mxu0 %v1725_v2 }
  0x2f   :  { %p1704_p13 = por %p1703_p12, %p1702_p11 }
  0x31   :  { %p1705_p0 = pnand %p1704_p13, %p1698_p10 }
  0xe8   :  { %v139_v10 = vpop.f32.mrf.mxu0 }
  0xe9   :  { %v140_v11 = vadd.f32 %v1311_v9, %v139_v10 }
  0xea   :  { %v1433_v12 = vpop.f32.mrf.mxu0 }
  0xeb   :  { %1639 = vtanh.f32 %v140_v11 }
  0xec   :  { %v142_v13 = vpop.f32.mrf.mxu0 }
  0xee   :  { %v1434_v14 = vpop.f32.mrf.mxu0 }
  0xf8   :  { %v1859_v15 = vpop.eup %1639 }
  0xf9   :  { %v146_v16 = vpack.c.bf16 %v1859_v15, %v1859_v15 }
  0xfb   :  { %1440 = vmatmul.mubr.msk.bf16.vlgmr.msra.gmra.mxu1 %vm101_vm1, %v146_v16 }
  0xfc   :  { %1453 = vmatprep.mubr.msk.bf16.mxu1 %vm1726_vm0, %v1725_v2  ;;  %1452 = vmatpush3.bf16.msra.mxu1 %v331_v49 }
  0xfd   :  { %1465 = vmatprep.subr.bf16.mxu1 %v1725_v2 }
 0x1bb   :  { %v207_v19 = vpop.f32.mrf.mxu1 }
 0x1bc   :  { %v1873_v20 = vadd.f32 %v1315_v18, %v207_v19 }
 0x1bd   :  { %v1441_v21 = vpop.f32.mrf.mxu1 }
 0x1be   :  { %v251_v22 = vpack.c.bf16 %v1873_v20, %v1873_v20  ;;  %v222_v31 = vand.u32 2147483647, %v1873_v20  ;;  %v219_v50 = vmax.f32 %v1873_v20, 0.0  ;;  %vm220_vm5 = vcmp.ne.f32.partialorder %v1873_v20, %v1873_v20  ;;  %v1948_v21 = vld [vmem:[%s2097_s12] sm:$0xff]  }
 0x1bf   :  { %v210_v23 = vpop.f32.mrf.mxu1 }
 0x1c0   :  { %1448 = vmatmul.mubr.msk.bf16.vlgmr.msra.gmra.mxu0 %vm101_vm1, %v251_v22  ;;  %v223_v32 = vsub.f32 0.0, %v222_v31  ;;  %v1955_v22 = vld [vmem:[%s2096_s11] ss:$0 sm:$0xff]  ;;  %s457_s11 = sld [smem:[#allocation3]] }
 0x1c1   :  { %v1442_v24 = vpop.f32.mrf.mxu1  ;;  %1461 = vmatprep.mubr.msk.bf16.mxu0 %vm1726_vm0, %v1725_v2  ;;  %1458 = vmatpush3.bf16.msra.mxu0 %v1632_v53 }
 0x1c2   :  { %v224_v33 = vmul.f32 1.442695, %v223_v32  ;;  %1459 = vmatprep.subr.bf16.mxu0 %v1725_v2 }
 0x1c4   :  { %1641 = vpow2.f32 %v224_v33 }
 0x1c5   :  { %1460 = vmatpush3.bf16.msra.mxu0 %v1633_v58 }
 0x1c6   :  { %1475 = vmatprep.subr.bf16.mxu0 %v1725_v2  ;;  %v593_v32 = vstv %s457_s11 }
 0x1d1   :  { %v1642_v37 = vpop.eup %1641 }
 0x1d2   :  { %v226_v38 = vadd.f32 1.0, %v1642_v37  ;;  %v229_v41 = vmul.f32 -0.5, %v1642_v37  ;;  %v232_v44 = vand.u32 2147483647, %v1642_v37 }
 0x1d4   :  { %v230_v43 = vadd.f32 1.0, %v229_v41  ;;  %vm233_vm3 = vcmp.lt.f32.partialorder %v232_v44, 0.0004427343 }
 0x1d6   :  { %v231_v46 = vmul.f32 %v1642_v37, %v230_v43 }
 0x280   :  { %v305_v25 = vpop.f32.mrf.mxu0 }
 0x281   :  { %v311_v26 = vmul.f32 0.17677669, %v305_v25 }
 0x282   :  { %v1449_v27 = vpop.f32.mrf.mxu0 }
 0x283   :  { %v313_v28 = vsel %vm312_vm2, %v311_v26, -inf }
 0x284   :  { %314 = vmax.xlane.f32.xlu0 %v313_v28  ;;  %v308_v29 = vpop.f32.mrf.mxu0 }
 0x286   :  { %v1450_v30 = vpop.f32.mrf.mxu0 }
 0x287   :  { %v1969_v30 = vld [vmem:[%s2098_s13] ss:$0 sm:$0xff]  ;;  %s1336_s13 = sld [smem:[#allocation3 + $0x1]] }
 0x28d   :  { %v692_v49 = vstv %s1336_s13 }
 0x30d   :  { %v315_v34 = vpop.xlane.xlu0 %314 }
 0x30e   :  { %v316_v35 = vsub.f32 %v311_v26, %v315_v34 }
 0x310   :  { %v317_v36 = vmul.f32 1.442695, %v316_v35 }
 0x312   :  { %1643 = vpow2.f32 %v317_v36 }
 0x313   :  { %1645 = vlog2.f32 %v226_v38 }
 0x31f   :  { %v1644_v39 = vpop.eup %1643 }
 0x320   :  { %v319_v40 = vsel %vm312_vm2, %v1644_v39, 0.0  ;;  %v1646_v42 = vpop.eup %1645 }
 0x321   :  { %320 = vadd.xlane.f32.xlu0 %v319_v40  ;;  %v228_v45 = vmul.f32 0.6931472, %v1646_v42 }
 0x323   :  { %v234_v48 = vsel %vm233_vm3, %v231_v46, %v228_v45  ;;  %vm1095_vm3 = vcmask 48168  }
 0x324   :  { %v235_v51 = vadd.f32 %v234_v48, %v219_v50 }
 0x326   :  { %v236_v52 = vsel %vm220_vm5, %v1873_v20, %v235_v51 }
 0x337   :  { %238 = vrot.lane.b32.xlu0 %v236_v52, %s1727_s2 }
 0x3aa   :  { %v321_v54 = vpop.xlane.xlu0 %320 }
 0x3ab   :  { %1647 = vrcp.f32 %v321_v54 }
 0x3ae   :  { %v239_v19 = vpop.permute.xlu0 %238 }
 0x3b8   :  { %v1648_v55 = vpop.eup %1647 }
 0x3b9   :  { %v323_v56 = vmul.f32 %v1648_v55, %v1644_v39 }
 0x3bb   :  { %v324_v57 = vpack.c.bf16 %v323_v56, %v323_v56 }
 0x3bd   :  { %1454 = vmatmul.mubr.msk.bf16.vlgmr.msra.gmra.mxu1 %vm312_vm2, %v324_v57  ;;  %vm996_vm2 = vcmask 39968  }
 0x3be   :  { %1471 = vmatprep.mubr.msk.bf16.mxu1 %vm1726_vm0, %v1725_v2  ;;  %1466 = vmatpush3.bf16.msra.mxu1 %v1907_v5 }
 0x3bf   :  { %1467 = vmatprep.subr.bf16.mxu1 %v1725_v2 }
 0x3c2   :  { %1468 = vmatpush3.bf16.msra.mxu1 %v1913_v6 }
 0x3c3   :  { %1469 = vmatprep.subr.bf16.mxu1 %v1725_v2 }
 0x3c6   :  { %1470 = vmatpush3.bf16.msra.mxu1 %v1921_v7 }
 0x3c7   :  { %1483 = vmatprep.subr.bf16.mxu1 %v1725_v2 }
 0x47d   :  { %v367_v59 = vpop.f32.mrf.mxu1 }
 0x47e   :  { %v373_v60 = vadd.f32 %v367_v59, %v1873_v20 }
 0x47f   :  { %v1455_v61 = vpop.f32.mrf.mxu1 }
 0x480   :  { %v374_v62 = vpack.c.bf16 %v373_v60, %v373_v60 }
 0x481   :  { %v370_v63 = vpop.f32.mrf.mxu1 }
 0x482   :  { %1462 = vmatmul.mubr.msk.bf16.vlgmr.msra.gmra.mxu0 %vm101_vm1, %v374_v62 }
 0x483   :  { %v1456_v0 = vpop.f32.mrf.mxu1  ;;  %1479 = vmatprep.mubr.msk.bf16.mxu0 %vm1726_vm0, %v1725_v2 }
 0x542   :  { %v435_v9 = vpop.f32.mrf.mxu0 }
 0x543   :  { %v436_v10 = vadd.f32 %v1323_v8, %v435_v9 }
 0x544   :  { %v1463_v11 = vpop.f32.mrf.mxu0 }
 0x545   :  { %442 = vrot.lane.b32.xlu1 %v436_v10, %s1729_s26 }
 0x546   :  { %v438_v12 = vpop.f32.mrf.mxu0 }
 0x548   :  { %v1464_v13 = vpop.f32.mrf.mxu0 }
 0x549   :  { %214 = vrot.lane.b32.xlu1 %v1859_v15, %s1730_s3 }
 0x54d   :  { %244 = vrot.lane.b32.xlu1 %v1873_v20, %s1727_s2  ;;  %v1941_v20 = vld [vmem:[%s2097_s12 + $0x8] sm:$0xff]   ;;  %s1735_s2 = smov 100  }
 0x54e   :  { %1476 = vmatpush3.bf16.msra.mxu0 %v1941_v20 }
 0x54f   :  { %1477 = vmatprep.subr.bf16.mxu0 %v1725_v2 }
 0x552   :  { %1478 = vmatpush3.bf16.msra.mxu0 %v1948_v21 }
 0x553   :  { %1493 = vmatprep.subr.bf16.mxu0 %v1725_v2 }
 0x5b7   :  { %v443_v14 = vpop.permute.xlu1 %442 }
 0x5b8   :  { %v445_v16 = vsel %vm101_vm1, %v373_v60, %v443_v14 }
 0x5b9   :  { %v458_v17 = vpack.c.bf16 %v445_v16, %v445_v16 }
 0x5bb   :  { %1472 = vmatmul.mubr.msk.bf16.vlgmr.msra.gmra.mxu1 %vm480_vm7, %v458_v17  ;;  %v215_v18 = vpop.permute.xlu1 %214 }
 0x5bc   :  { %218 = vst.msk [vmem:[#allocation8] sm:$0xff] %vm217_vm8, %v215_v18  ;;  %1484 = vmatpush3.bf16.msra.mxu1 %v1907_v5  ;;  %1489 = vmatprep.mubr.msk.bf16.mxu1 %vm1726_vm0, %v1725_v2 }
 0x5bd   :  { %242 = vst.msk [vmem:[#allocation8] sm:$0xff] %vm241_vm9, %v239_v19  ;;  %1485 = vmatprep.subr.bf16.mxu1 %v1725_v2 }
 0x5bf   :  { %v245_v15 = vpop.permute.xlu1 %244 }
 0x5c0   :  { %248 = vst.msk [vmem:[#allocation8] sm:$0xff] %vm247_vm10, %v245_v15  ;;  %1486 = vmatpush3.bf16.msra.mxu1 %v1913_v6 }
 0x5c1   :  { %1487 = vmatprep.subr.bf16.mxu1 %v1725_v2  ;;  %250 = vst.msk [vmem:[#allocation8] sm:$0xff] %vm249_vm11, %v1725_v2 }
 0x5c4   :  { %1488 = vmatpush3.bf16.msra.mxu1 %v1921_v7 }
 0x5c5   :  { %1511 = vmatprep.subr.bf16.mxu1 %v1725_v2 }
 0x67b   :  { %v524_v23 = vpop.f32.mrf.mxu1 }
 0x67c   :  { %v525_v24 = vadd.f32 %v1955_v22, %v524_v23 }
 0x67d   :  { %v1473_v25 = vpop.f32.mrf.mxu1 }
 0x67e   :  { %1649 = vtanh.f32 %v525_v24 }
 0x67f   :  { %v527_v26 = vpop.f32.mrf.mxu1 }
 0x680   :  { %v890_v26 = vstv %s1342_s18 }
 0x681   :  { %v1474_v27 = vpop.f32.mrf.mxu1 }
 0x68b   :  { %v1650_v28 = vpop.eup %1649 }
 0x68c   :  { %v531_v29 = vpack.c.bf16 %v1650_v28, %v1650_v28 }
 0x68e   :  { %1480 = vmatmul.mubr.msk.bf16.vlgmr.msra.gmra.mxu0 %vm101_vm1, %v531_v29 }
 0x68f   :  { %1494 = vmatpush3.bf16.msra.mxu0 %v1941_v20  ;;  %1497 = vmatprep.mubr.msk.bf16.mxu0 %vm1726_vm0, %v1725_v2 }
 0x690   :  { %1495 = vmatprep.subr.bf16.mxu0 %v1725_v2 }
 0x693   :  { %1496 = vmatpush3.bf16.msra.mxu0 %v1948_v21 }
 0x694   :  { %1501 = vmatprep.subr.bf16.mxu0 %v1725_v2 }
 0x74e   :  { %v587_v31 = vpop.f32.mrf.mxu0 }
 0x74f   :  { %v588_v33 = vadd.f32 %v1969_v30, %v587_v31 }
 0x750   :  { %v1481_v34 = vpop.f32.mrf.mxu0 }
 0x751   :  { %v594_v35 = vmul.f32 %v593_v32, %v588_v33 }
 0x752   :  { %v590_v36 = vpop.f32.mrf.mxu0 }
 0x753   :  { %v595_v37 = vadd.f32 %v594_v35, %v445_v16 }
 0x754   :  { %v1482_v38 = vpop.f32.mrf.mxu0 }
 0x755   :  { %597 = vrot.lane.b32.xlu1 %v595_v37, %s1731_s15  ;;  %v603_v39 = vpack.c.bf16 %v595_v37, %v595_v37 }
 0x757   :  { %1490 = vmatmul.mubr.msk.bf16.vlgmr.msra.gmra.mxu1 %vm480_vm7, %v603_v39 }
 0x758   :  { %1512 = vmatpush3.bf16.msra.mxu1 %v1941_v20  ;;  %1515 = vmatprep.mubr.msk.bf16.mxu1 %vm1726_vm0, %v1725_v2 }
 0x759   :  { %1513 = vmatprep.subr.bf16.mxu1 %v1725_v2 }
 0x75c   :  { %1514 = vmatpush3.bf16.msra.mxu1 %v1948_v21 }
 0x75d   :  { %1519 = vmatprep.subr.bf16.mxu1 %v1725_v2 }
 0x7c7   :  { %v598_v40 = vpop.permute.xlu1 %597 }
 0x7c8   :  { %601 = vst.msk [vmem:[#allocation8] sm:$0xff] %vm600_vm12, %v598_v40 }
 0x817   :  { %v641_v41 = vpop.f32.mrf.mxu1 }
 0x818   :  { %v642_v42 = vadd.f32 %v1955_v22, %v641_v41 }
 0x819   :  { %v1491_v43 = vpop.f32.mrf.mxu1 }
 0x81a   :  { %1651 = vtanh.f32 %v642_v42 }
 0x81b   :  { %v644_v44 = vpop.f32.mrf.mxu1 }
 0x81c   :  { %v989_v44 = vstv %s1345_s19 }
 0x81d   :  { %v1492_v45 = vpop.f32.mrf.mxu1 }
 0x827   :  { %v1652_v46 = vpop.eup %1651 }
 0x828   :  { %v648_v47 = vpack.c.bf16 %v1652_v46, %v1652_v46 }
 0x82a   :  { %1498 = vmatmul.mubr.msk.bf16.vlgmr.msra.gmra.mxu0 %vm101_vm1, %v648_v47 }
 0x82b   :  { %1502 = vmatpush3.bf16.msra.mxu0 %v1907_v5  ;;  %1507 = vmatprep.mubr.msk.bf16.mxu0 %vm1726_vm0, %v1725_v2 }
 0x82c   :  { %1503 = vmatprep.subr.bf16.mxu0 %v1725_v2 }
 0x82f   :  { %1504 = vmatpush3.bf16.msra.mxu0 %v1913_v6 }
 0x830   :  { %1505 = vmatprep.subr.bf16.mxu0 %v1725_v2 }
 0x833   :  { %1506 = vmatpush3.bf16.msra.mxu0 %v1921_v7 }
 0x834   :  { %1529 = vmatprep.subr.bf16.mxu0 %v1725_v2 }
 0x8ea   :  { %v686_v48 = vpop.f32.mrf.mxu0 }
 0x8eb   :  { %v687_v50 = vadd.f32 %v1969_v30, %v686_v48 }
 0x8ec   :  { %v1499_v51 = vpop.f32.mrf.mxu0 }
 0x8ed   :  { %v693_v52 = vmul.f32 %v692_v49, %v687_v50 }
 0x8ee   :  { %v689_v53 = vpop.f32.mrf.mxu0 }
 0x8ef   :  { %v694_v54 = vadd.f32 %v693_v52, %v595_v37 }
 0x8f0   :  { %v1500_v55 = vpop.f32.mrf.mxu0 }
 0x8f1   :  { %696 = vrot.lane.b32.xlu1 %v694_v54, %s1732_s16  ;;  %v702_v56 = vpack.c.bf16 %v694_v54, %v694_v54 }
 0x8f3   :  { %1508 = vmatmul.mubr.msk.bf16.vlgmr.msra.gmra.mxu0 %vm480_vm7, %v702_v56 }
 0x8f4   :  { %1530 = vmatpush3.bf16.msra.mxu0 %v1941_v20  ;;  %1533 = vmatprep.mubr.msk.bf16.mxu0 %vm1726_vm0, %v1725_v2 }
 0x8f5   :  { %1531 = vmatprep.subr.bf16.mxu0 %v1725_v2 }
 0x8f8   :  { %1532 = vmatpush3.bf16.msra.mxu0 %v1948_v21 }
 0x8f9   :  { %1537 = vmatprep.subr.bf16.mxu0 %v1725_v2 }
 0x963   :  { %v697_v57 = vpop.permute.xlu1 %696 }
 0x964   :  { %700 = vst.msk [vmem:[#allocation8] sm:$0xff] %vm699_vm13, %v697_v57 }
 0x9b3   :  { %v740_v58 = vpop.f32.mrf.mxu0 }
 0x9b4   :  { %v741_v59 = vadd.f32 %v1955_v22, %v740_v58 }
 0x9b5   :  { %v1509_v60 = vpop.f32.mrf.mxu0 }
 0x9b6   :  { %1653 = vtanh.f32 %v741_v59 }
 0x9b7   :  { %v743_v61 = vpop.f32.mrf.mxu0 }
 0x9b8   :  { %v1088_v61 = vstv %s1348_s7 }
 0x9b9   :  { %v1510_v62 = vpop.f32.mrf.mxu0 }
 0x9c3   :  { %v1654_v63 = vpop.eup %1653 }
 0x9c4   :  { %v747_v0 = vpack.c.bf16 %v1654_v63, %v1654_v63 }
 0x9c6   :  { %1516 = vmatmul.mubr.msk.bf16.vlgmr.msra.gmra.mxu1 %vm101_vm1, %v747_v0 }
 0x9c7   :  { %1520 = vmatpush3.bf16.msra.mxu1 %v1907_v5  ;;  %1525 = vmatprep.mubr.msk.bf16.mxu1 %vm1726_vm0, %v1725_v2 }
 0x9c8   :  { %1521 = vmatprep.subr.bf16.mxu1 %v1725_v2 }
 0x9cb   :  { %1522 = vmatpush3.bf16.msra.mxu1 %v1913_v6 }
 0x9cc   :  { %1523 = vmatprep.subr.bf16.mxu1 %v1725_v2 }
 0x9cf   :  { %1524 = vmatpush3.bf16.msra.mxu1 %v1921_v7 }
 0x9d0   :  { %1547 = vmatprep.subr.bf16.mxu1 %v1725_v2 }
 0xa86   :  { %v785_v1 = vpop.f32.mrf.mxu1 }
 0xa87   :  { %v786_v4 = vadd.f32 %v1969_v30, %v785_v1 }
 0xa88   :  { %v1517_v8 = vpop.f32.mrf.mxu1 }
 0xa89   :  { %v792_v9 = vmul.f32 %v791_v3, %v786_v4 }
 0xa8a   :  { %v788_v10 = vpop.f32.mrf.mxu1 }
 0xa8b   :  { %v793_v11 = vadd.f32 %v792_v9, %v694_v54 }
 0xa8c   :  { %v1518_v12 = vpop.f32.mrf.mxu1 }
 0xa8d   :  { %795 = vrot.lane.b32.xlu1 %v793_v11, %s1733_s6  ;;  %v801_v13 = vpack.c.bf16 %v793_v11, %v793_v11 }
 0xa8f   :  { %1526 = vmatmul.mubr.msk.bf16.vlgmr.msra.gmra.mxu1 %vm480_vm7, %v801_v13 }
 0xa90   :  { %1548 = vmatpush3.bf16.msra.mxu1 %v1941_v20  ;;  %1551 = vmatprep.mubr.msk.bf16.mxu1 %vm1726_vm0, %v1725_v2 }
 0xa91   :  { %1549 = vmatprep.subr.bf16.mxu1 %v1725_v2 }
 0xa94   :  { %1550 = vmatpush3.bf16.msra.mxu1 %v1948_v21 }
 0xa95   :  { %1555 = vmatprep.subr.bf16.mxu1 %v1725_v2 }
 0xaff   :  { %v796_v14 = vpop.permute.xlu1 %795 }
 0xb00   :  { %799 = vst.msk [vmem:[#allocation8] sm:$0xff] %vm798_vm14, %v796_v14 }
 0xb4f   :  { %v839_v16 = vpop.f32.mrf.mxu1 }
 0xb50   :  { %v840_v17 = vadd.f32 %v1955_v22, %v839_v16 }
 0xb51   :  { %v1527_v18 = vpop.f32.mrf.mxu1 }
 0xb52   :  { %1655 = vtanh.f32 %v840_v17 }
 0xb53   :  { %v842_v19 = vpop.f32.mrf.mxu1 }
 0xb55   :  { %v1528_v15 = vpop.f32.mrf.mxu1 }
 0xb5f   :  { %v1656_v23 = vpop.eup %1655 }
 0xb60   :  { %v846_v24 = vpack.c.bf16 %v1656_v23, %v1656_v23 }
 0xb62   :  { %1534 = vmatmul.mubr.msk.bf16.vlgmr.msra.gmra.mxu0 %vm101_vm1, %v846_v24 }
 0xb63   :  { %1538 = vmatpush3.bf16.msra.mxu0 %v1907_v5  ;;  %1543 = vmatprep.mubr.msk.bf16.mxu0 %vm1726_vm0, %v1725_v2 }
 0xb64   :  { %1539 = vmatprep.subr.bf16.mxu0 %v1725_v2 }
 0xb67   :  { %1540 = vmatpush3.bf16.msra.mxu0 %v1913_v6 }
 0xb68   :  { %1541 = vmatprep.subr.bf16.mxu0 %v1725_v2 }
 0xb6b   :  { %1542 = vmatpush3.bf16.msra.mxu0 %v1921_v7 }
 0xb6c   :  { %1565 = vmatprep.subr.bf16.mxu0 %v1725_v2 }
 0xc22   :  { %v884_v25 = vpop.f32.mrf.mxu0 }
 0xc23   :  { %v885_v27 = vadd.f32 %v1969_v30, %v884_v25 }
 0xc24   :  { %v1535_v28 = vpop.f32.mrf.mxu0 }
 0xc25   :  { %v891_v29 = vmul.f32 %v890_v26, %v885_v27 }
 0xc26   :  { %v887_v31 = vpop.f32.mrf.mxu0 }
 0xc27   :  { %v892_v32 = vadd.f32 %v891_v29, %v793_v11 }
 0xc28   :  { %v1536_v33 = vpop.f32.mrf.mxu0 }
 0xc29   :  { %894 = vrot.lane.b32.xlu1 %v892_v32, %s1734_s5  ;;  %v900_v34 = vpack.c.bf16 %v892_v32, %v892_v32  ;;  %v1286_v33 = vstv %s1354_s0 }
 0xc2b   :  { %1544 = vmatmul.mubr.msk.bf16.vlgmr.msra.gmra.mxu0 %vm480_vm7, %v900_v34 }
 0xc2c   :  { %1566 = vmatpush3.bf16.msra.mxu0 %v1941_v20  ;;  %1569 = vmatprep.mubr.msk.bf16.mxu0 %vm1726_vm0, %v1725_v2 }
 0xc2d   :  { %1567 = vmatprep.subr.bf16.mxu0 %v1725_v2 }
 0xc30   :  { %1568 = vmatpush3.bf16.msra.mxu0 %v1948_v21 }
 0xc31   :  { %1573 = vmatprep.subr.bf16.mxu0 %v1725_v2 }
 0xc9b   :  { %v895_v35 = vpop.permute.xlu1 %894 }
 0xc9c   :  { %898 = vst.msk [vmem:[#allocation8] sm:$0xff] %vm897_vm15, %v895_v35 }
 0xceb   :  { %v938_v36 = vpop.f32.mrf.mxu0 }
 0xcec   :  { %v939_v37 = vadd.f32 %v1955_v22, %v938_v36 }
 0xced   :  { %v1545_v38 = vpop.f32.mrf.mxu0 }
 0xcee   :  { %1657 = vtanh.f32 %v939_v37 }
 0xcef   :  { %v941_v39 = vpop.f32.mrf.mxu0 }
 0xcf1   :  { %v1546_v40 = vpop.f32.mrf.mxu0 }
 0xcfb   :  { %v1658_v41 = vpop.eup %1657 }
 0xcfc   :  { %v945_v42 = vpack.c.bf16 %v1658_v41, %v1658_v41 }
 0xcfe   :  { %1552 = vmatmul.mubr.msk.bf16.vlgmr.msra.gmra.mxu1 %vm101_vm1, %v945_v42 }
 0xcff   :  { %1556 = vmatpush3.bf16.msra.mxu1 %v1907_v5  ;;  %1561 = vmatprep.mubr.msk.bf16.mxu1 %vm1726_vm0, %v1725_v2 }
 0xd00   :  { %1557 = vmatprep.subr.bf16.mxu1 %v1725_v2 }
 0xd03   :  { %1558 = vmatpush3.bf16.msra.mxu1 %v1913_v6 }
 0xd04   :  { %1559 = vmatprep.subr.bf16.mxu1 %v1725_v2 }
 0xd07   :  { %1560 = vmatpush3.bf16.msra.mxu1 %v1921_v7 }
 0xd08   :  { %1583 = vmatprep.subr.bf16.mxu1 %v1725_v2 }
 0xdbe   :  { %v983_v43 = vpop.f32.mrf.mxu1 }
 0xdbf   :  { %v984_v45 = vadd.f32 %v1969_v30, %v983_v43 }
 0xdc0   :  { %v1553_v46 = vpop.f32.mrf.mxu1 }
 0xdc1   :  { %v990_v47 = vmul.f32 %v989_v44, %v984_v45 }
 0xdc2   :  { %v986_v48 = vpop.f32.mrf.mxu1 }
 0xdc3   :  { %v991_v49 = vadd.f32 %v990_v47, %v892_v32 }
 0xdc4   :  { %v1554_v50 = vpop.f32.mrf.mxu1 }
 0xdc5   :  { %993 = vrot.lane.b32.xlu1 %v991_v49, %s1735_s2  ;;  %v999_v51 = vpack.c.bf16 %v991_v49, %v991_v49 }
 0xdc7   :  { %1562 = vmatmul.mubr.msk.bf16.vlgmr.msra.gmra.mxu1 %vm480_vm7, %v999_v51 }
 0xdc8   :  { %1584 = vmatpush3.bf16.msra.mxu1 %v1941_v20  ;;  %1587 = vmatprep.mubr.msk.bf16.mxu1 %vm1726_vm0, %v1725_v2 }
 0xdc9   :  { %1585 = vmatprep.subr.bf16.mxu1 %v1725_v2 }
 0xdcc   :  { %1586 = vmatpush3.bf16.msra.mxu1 %v1948_v21 }
 0xdcd   :  { %1591 = vmatprep.subr.bf16.mxu1 %v1725_v2 }
 0xe37   :  { %v994_v52 = vpop.permute.xlu1 %993 }
 0xe38   :  { %997 = vst.msk [vmem:[#allocation8] sm:$0xff] %vm996_vm2, %v994_v52 }
 0xe87   :  { %v1037_v53 = vpop.f32.mrf.mxu1 }
 0xe88   :  { %v1038_v54 = vadd.f32 %v1955_v22, %v1037_v53 }
 0xe89   :  { %v1563_v55 = vpop.f32.mrf.mxu1 }
 0xe8a   :  { %1659 = vtanh.f32 %v1038_v54 }
 0xe8b   :  { %v1040_v56 = vpop.f32.mrf.mxu1 }
 0xe8d   :  { %v1564_v57 = vpop.f32.mrf.mxu1 }
 0xe97   :  { %v1660_v58 = vpop.eup %1659 }
 0xe98   :  { %v1044_v59 = vpack.c.bf16 %v1660_v58, %v1660_v58 }
 0xe9a   :  { %1570 = vmatmul.mubr.msk.bf16.vlgmr.msra.gmra.mxu0 %vm101_vm1, %v1044_v59 }
 0xe9b   :  { %1574 = vmatpush3.bf16.msra.mxu0 %v1907_v5  ;;  %1579 = vmatprep.mubr.msk.bf16.mxu0 %vm1726_vm0, %v1725_v2 }
 0xe9c   :  { %1575 = vmatprep.subr.bf16.mxu0 %v1725_v2 }
 0xe9f   :  { %1576 = vmatpush3.bf16.msra.mxu0 %v1913_v6 }
 0xea0   :  { %1577 = vmatprep.subr.bf16.mxu0 %v1725_v2 }
 0xea3   :  { %1578 = vmatpush3.bf16.msra.mxu0 %v1921_v7 }
 0xea4   :  { %1601 = vmatprep.subr.bf16.mxu0 %v1725_v2 }
 0xf5a   :  { %v1082_v60 = vpop.f32.mrf.mxu0 }
 0xf5b   :  { %v1083_v62 = vadd.f32 %v1969_v30, %v1082_v60 }
 0xf5c   :  { %v1571_v63 = vpop.f32.mrf.mxu0 }
 0xf5d   :  { %v1089_v0 = vmul.f32 %v1088_v61, %v1083_v62 }
 0xf5e   :  { %v1085_v1 = vpop.f32.mrf.mxu0 }
 0xf5f   :  { %v1090_v3 = vadd.f32 %v1089_v0, %v991_v49 }
 0xf60   :  { %v1572_v4 = vpop.f32.mrf.mxu0 }
 0xf61   :  { %1092 = vrot.lane.b32.xlu0 %v1090_v3, %s1736_s20  ;;  %v1098_v8 = vpack.c.bf16 %v1090_v3, %v1090_v3 }
 0xf63   :  { %1580 = vmatmul.mubr.msk.bf16.vlgmr.msra.gmra.mxu0 %vm480_vm7, %v1098_v8 }
 0xf64   :  { %1602 = vmatpush3.bf16.msra.mxu0 %v1941_v20  ;;  %1605 = vmatprep.mubr.msk.bf16.mxu0 %vm1726_vm0, %v1725_v2 }
 0xf65   :  { %1603 = vmatprep.subr.bf16.mxu0 %v1725_v2 }
 0xf68   :  { %1604 = vmatpush3.bf16.msra.mxu0 %v1948_v21  ;;  %v1187_v21 = vstv %s1351_s9 }
 0xfd3   :  { %v1093_v9 = vpop.permute.xlu0 %1092 }
 0xfd4   :  { %1096 = vst.msk [vmem:[#allocation8] sm:$0xff] %vm1095_vm3, %v1093_v9 }
0x1023   :  { %v1136_v10 = vpop.f32.mrf.mxu0 }
0x1024   :  { %v1137_v11 = vadd.f32 %v1955_v22, %v1136_v10 }
0x1025   :  { %v1581_v12 = vpop.f32.mrf.mxu0 }
0x1026   :  { %1661 = vtanh.f32 %v1137_v11 }
0x1027   :  { %v1139_v13 = vpop.f32.mrf.mxu0 }
0x1029   :  { %v1582_v14 = vpop.f32.mrf.mxu0 }
0x1033   :  { %v1662_v16 = vpop.eup %1661 }
0x1034   :  { %v1143_v17 = vpack.c.bf16 %v1662_v16, %v1662_v16 }
0x1036   :  { %1588 = vmatmul.mubr.msk.bf16.vlgmr.msra.gmra.mxu1 %vm101_vm1, %v1143_v17 }
0x1037   :  { %1592 = vmatpush3.bf16.msra.mxu1 %v1907_v5  ;;  %1597 = vmatprep.mubr.msk.bf16.mxu1 %vm1726_vm0, %v1725_v2  ;;  %vm1194_vm0 = vcmask 56368  }
0x1038   :  { %1593 = vmatprep.subr.bf16.mxu1 %v1725_v2 }
0x103b   :  { %1594 = vmatpush3.bf16.msra.mxu1 %v1913_v6 }
0x103c   :  { %1595 = vmatprep.subr.bf16.mxu1 %v1725_v2 }
0x103f   :  { %1596 = vmatpush3.bf16.msra.mxu1 %v1921_v7 }
0x10f6   :  { %v1181_v20 = vpop.f32.mrf.mxu1 }
0x10f7   :  { %v1182_v18 = vadd.f32 %v1969_v30, %v1181_v20 }
0x10f8   :  { %v1589_v19 = vpop.f32.mrf.mxu1 }
0x10f9   :  { %v1188_v15 = vmul.f32 %v1187_v21, %v1182_v18 }
0x10fa   :  { %v1184_v23 = vpop.f32.mrf.mxu1 }
0x10fb   :  { %v1189_v5 = vadd.f32 %v1188_v15, %v1090_v3 }
0x10fc   :  { %v1590_v24 = vpop.f32.mrf.mxu1 }
0x10fd   :  { %1191 = vrot.lane.b32.xlu1 %v1189_v5, %s1737_s21  ;;  %v1197_v25 = vpack.c.bf16 %v1189_v5, %v1189_v5 }
0x10ff   :  { %1598 = vmatmul.mubr.msk.bf16.vlgmr.msra.gmra.mxu1 %vm480_vm7, %v1197_v25 }
0x116f   :  { %v1192_v6 = vpop.permute.xlu1 %1191 }
0x1170   :  { %1195 = vst.msk [vmem:[#allocation8] sm:$0xff] %vm1194_vm0, %v1192_v6 }
0x11bf   :  { %v1235_v2 = vpop.f32.mrf.mxu1 }
0x11c0   :  { %v1236_v7 = vadd.f32 %v1955_v22, %v1235_v2 }
0x11c1   :  { %v1599_v26 = vpop.f32.mrf.mxu1 }
0x11c2   :  { %1663 = vtanh.f32 %v1236_v7 }
0x11c3   :  { %v1238_v27 = vpop.f32.mrf.mxu1 }
0x11c5   :  { %v1600_v28 = vpop.f32.mrf.mxu1 }
0x11cf   :  { %v1664_v29 = vpop.eup %1663 }
0x11d0   :  { %v1242_v31 = vpack.c.bf16 %v1664_v29, %v1664_v29 }
0x11d2   :  { %1606 = vmatmul.mubr.msk.bf16.vlgmr.msra.gmra.mxu0 %vm101_vm1, %v1242_v31 }
0x1292   :  { %v1280_v32 = vpop.f32.mrf.mxu0 }
0x1293   :  { %v1281_v34 = vadd.f32 %v1969_v30, %v1280_v32 }
0x1294   :  { %v1607_v35 = vpop.f32.mrf.mxu0 }
0x1295   :  { %v1287_v36 = vmul.f32 %v1286_v33, %v1281_v34 }
0x1296   :  { %v1283_v37 = vpop.f32.mrf.mxu0 }
0x1297   :  { %v1288_v38 = vadd.f32 %v1287_v36, %v1189_v5 }
0x1298   :  { %v1608_v39 = vpop.f32.mrf.mxu0 }
0x1299   :  { %1290 = vrot.lane.b32.xlu0 %v1288_v38, %s1738_s22 }
0x130b   :  { %v1291_v22 = vpop.permute.xlu0 %1290 }
0x130c   :  { %1294 = vst.msk [vmem:[#allocation8] sm:$0xff] %vm1293_vm4, %v1291_v22 }
0x130d   :  { %1708 = shalt.err (!%p1705_p0)
}
0x130e   :  { %1304 = dma.vmem_to_hbm [thread:$0]  %s1302_s23, 128, %s2099_s14, [#allocation5]  }
0x130f   :  { %1721 = dma.done.wait [#allocation5], 128  }
0x1310   :  { %1722 = vsyncadd [#allocation5], 4294967168 }
0x1311   :  { %1308 = vsyncpa [#allocation4], 1 }
0x1312   :  { %1309 = vsyncpa [#allocation5], 1 }
0x1313   :  { %1310 = vsyncpa [#allocation6], 1 }

</bundles_post_ra>
